<compile_context>
chip_gen: v7x
topology: tpu7x:2x2x1
jax: 0.10.0
libtpu: 0.0.40
codegen_flags: <defaults>
</compile_context>

<pallas_src>
import jax
import jax.numpy as jnp
from jax.experimental import pallas as pl
from jax.experimental.pallas import tpu as pltpu


def _adjust_kernel(sb_ref, x_ref, o_ref):
    # sb_ref: SMEM (2,) float32 holding [|scale[idx]|, bias[idx]]
    # x_ref / o_ref: VMEM (TILE_ROWS, 128) tiles
    o_ref[...] = x_ref[...] * sb_ref[0] + sb_ref[1]


def adjust_layer(x, num_samples, scale, bias, *, tile_rows=4096):
    """x: any-shape float32 tensor (e.g. NCHW). num_samples: python int / int32.

    scale, bias: (num_adjust, 1) float32 parameters.
    Returns x * |scale[num_samples-1]| + bias[num_samples-1], same shape as x.
    """
    orig_shape = x.shape
    total = x.size

    # Hoist the table lookup + abs out of the kernel: two scalars in SMEM.
    idx = num_samples - 1
    s = jnp.abs(scale[idx, 0])
    b = bias[idx, 0]
    sb = jnp.stack([s, b]).astype(jnp.float32)

    # Flatten to a lane-dense 2D slab, padding to a multiple of one aligned
    # (8, 128) vreg tile so any NCHW shape is accepted.
    flat = x.reshape(-1)
    pad = (-total) % (8 * 128)
    if pad:
        flat = jnp.pad(flat, (0, pad))
    rows = flat.size // 128
    x2d = flat.reshape(rows, 128)

    # Block size: at most `tile_rows` rows (2 MiB f32 at 4096), shrunk for
    # small inputs so we don't allocate oversized VMEM buffers.
    trows = min(tile_rows, rows)
    trows = max(8, (trows // 8) * 8)  # keep sublane-aligned
    grid = (pl.cdiv(rows, trows),)

    out2d = pl.pallas_call(
        _adjust_kernel,
        out_shape=jax.ShapeDtypeStruct((rows, 128), x.dtype),
        grid=grid,
        in_specs=[
            pl.BlockSpec(memory_space=pltpu.MemorySpace.SMEM),      # [s, b]
            pl.BlockSpec((trows, 128), lambda g: (g, 0)),           # x tile
        ],
        out_specs=pl.BlockSpec((trows, 128), lambda g: (g, 0)),
        compiler_params=pltpu.CompilerParams(
            dimension_semantics=("parallel",)),
    )(sb, x2d)

    out_flat = out2d.reshape(-1)
    if pad:
        out_flat = out_flat[:total]
    return out_flat.reshape(orig_shape)


if __name__ == "__main__":
    key = jax.random.PRNGKey(0)

    # Module parameters (deterministic init, matching __init__ shapes):
    # init_scale=3, init_bias=0, num_adjust=5  -> scale/bias: (5, 1)
    num_adjust = 5
    init_scale = 3.0
    init_bias = 0.0
    scale = jnp.full((num_adjust, 1), init_scale, dtype=jnp.float32)
    bias = jnp.full((num_adjust, 1), init_bias, dtype=jnp.float32)
    # Perturb scale so |.| and indexing are actually exercised (still deterministic).
    scale = scale * jnp.array([[-1.0], [1.0], [-0.5], [2.0], [1.0]], dtype=jnp.float32)
    bias = bias + jnp.array([[0.1], [-0.2], [0.3], [0.0], [0.5]], dtype=jnp.float32)

    # Example input: NCHW feature map, small shape.
    x = jax.random.normal(key, (2, 4, 16, 16), dtype=jnp.float32)
    num_samples = 3  # selects row index 2

    out = adjust_layer(x, num_samples, scale, bias)
    out = jax.block_until_ready(out)

    # Reference check in plain JAX (same math as the PyTorch forward).
    ref = x * jnp.abs(scale[num_samples - 1]) + bias[num_samples - 1]
    assert out.shape == x.shape
    assert jnp.allclose(out, ref, atol=1e-6, rtol=1e-6)

    # Also exercise a non-128-divisible shape to cover the padded-tile path.
    x2 = jax.random.normal(jax.random.PRNGKey(1), (3, 5, 7, 11), dtype=jnp.float32)
    out2 = jax.block_until_ready(adjust_layer(x2, 1, scale, bias))
    ref2 = x2 * jnp.abs(scale[0]) + bias[0]
    assert out2.shape == x2.shape
    assert jnp.allclose(out2, ref2, atol=1e-6, rtol=1e-6)

    print("KERNEL_OK")
</pallas_src>

<mosaic_0001>
module attributes {stable_mosaic.version = 11 : i64} {
  func.func @_adjust_kernel(%arg0: i32, %arg1: memref<2xf32, #tpu.memory_space<smem>>, %arg2: memref<16x128xf32, #tpu.memory_space<vmem>>, %arg3: memref<16x128xf32, #tpu.memory_space<vmem>>) attributes {dimension_semantics = [#tpu.dimension_semantics<parallel>], iteration_bounds = array<i64: 1>, scalar_prefetch = 0 : i64, scratch_operands = 0 : i64, tpu.core_type = #tpu.core_type<tc>, window_params = [{transform_indices = @transform_0, window_bounds = array<i64: 2>}, {transform_indices = @transform_1, window_bounds = array<i64: 16, 128>}, {transform_indices = @transform_2, window_bounds = array<i64: 16, 128>}]} {
    %c0 = arith.constant 0 : index
    %c0_0 = arith.constant 0 : index
    %0 = vector.load %arg2[%c0, %c0_0] : memref<16x128xf32, #tpu.memory_space<vmem>>, vector<16x128xf32>
    %c0_1 = arith.constant 0 : index
    %1 = memref.load %arg1[%c0_1] : memref<2xf32, #tpu.memory_space<smem>>
    %2 = vector.broadcast %1 : f32 to vector<16x128xf32>
    %3 = arith.mulf %0, %2 : vector<16x128xf32>
    %c1 = arith.constant 1 : index
    %4 = memref.load %arg1[%c1] : memref<2xf32, #tpu.memory_space<smem>>
    %5 = vector.broadcast %4 : f32 to vector<16x128xf32>
    %6 = arith.addf %3, %5 : vector<16x128xf32>
    %c0_2 = arith.constant 0 : index
    %c0_3 = arith.constant 0 : index
    %7 = vector.load %arg3[%c0_2, %c0_3] : memref<16x128xf32, #tpu.memory_space<vmem>>, vector<16x128xf32>
    tpu.vector_store %arg3[%c0_2, %c0_3], %6 {strides = array<i32>} : memref<16x128xf32, #tpu.memory_space<vmem>>, vector<16x128xf32>,
    return
  }
  func.func @transform_0(%arg0: i32) -> i32 {
    %c0_i32 = arith.constant 0 : i32
    %c0_i32_0 = arith.constant 0 : i32
    return %c0_i32 : i32
  }
  func.func @transform_1(%arg0: i32) -> (i32, i32) {
    %c0_i32 = arith.constant 0 : i32
    %c0_i32_0 = arith.constant 0 : i32
    return %arg0, %c0_i32 : i32, i32
  }
  func.func @transform_2(%arg0: i32) -> (i32, i32) {
    %c0_i32 = arith.constant 0 : i32
    %c0_i32_0 = arith.constant 0 : i32
    return %arg0, %c0_i32 : i32, i32
  }
}

</mosaic_0001>

<bundles_post_ra>
// kernel: tpu_custom_call.1
= control target key start
LH: loop header
LB: loop body
LE: loop exit
PB: predicated region body
PF: predicated region fallthrough
CT: control target
= control target key end

     0   :  { %7 = vsyncpa [#allocation5], 0  ;;  %s195_s0 = inlined_call_operand.hbm [shape: f32[2], index: 0, kind: input, shape index: {}]   ;;  %s196_s1 = inlined_call_operand.hbm [shape: f32[16,128], index: 1, kind: input, shape index: {}]   ;;  %s197_s2 = inlined_call_operand.hbm [shape: f32[16,128], index: 2, kind: output, shape index: {}]  }
   0x1   :  { %8 = vsyncpa [#allocation3], 0 }
   0x2   :  { %9 = vsyncpa [#allocation4], 0  ;;  %s73_s11 = scalar_lea.hbm %s195_s0, 16 }
   0x3   :  { %p74_p0 = scmp.ne.s32.totalorder %s195_s0, %s73_s11  ;;  %p77_p1 = scmp.lt.u32.totalorder %s73_s11, %s195_s0 }
   0x5   :  { %p79_p2 = pnand %p77_p1, %p74_p0 }
   0x7   :  { %82 = shalt.err (!%p79_p2)
}
   0x8   :  { %s133_s16 = smov [#allocation2]   ;;  %s134_s19 = smov [#allocation6]  }
   0x9   :  { %17 = dma.hbm_to_smem %s195_s0, 16, %s133_s16, [#allocation5]  }
   0xa   :  { %s23_s20 = sshll.u32 %s134_s19, 4  ;;  %s83_s23 = scalar_lea.hbm %s196_s1, 256  ;;  %s24_s20 = int_to_ptr.vmem [resolvable:$true] %s23_s20 }
   0xb   :  { %p84_p3 = scmp.ne.s32.totalorder %s196_s1, %s83_s23  ;;  %p87_p4 = scmp.lt.u32.totalorder %s83_s23, %s196_s1 }
   0xd   :  { %p89_p5 = pnand %p87_p4, %p84_p3 }
   0xf   :  { %92 = shalt.err (!%p89_p5)
}
  0x10   :  { %s93_s28 = scalar_lea.vmem %s24_s20, 256  ;;  %p98_p7 = scmp.lt.s32.totalorder %s24_s20, %s24_s20 }
  0x11   :  { %p94_p6 = scmp.ne.s32.totalorder %s24_s20, %s93_s28  ;;  %p99_p8 = scmp.lt.s32.totalorder %s93_s28, %s93_s28 }
  0x13   :  { %p100_p9 = por %p99_p8, %p98_p7 }
  0x15   :  { %p101_p10 = pnand %p100_p9, %p94_p6 }
  0x17   :  { %104 = shalt.err (!%p101_p10)
}
  0x18   :  { %s135_s0 = smov 128   ;;  %s136_s29 = smov 8  }
  0x19   :  { %29 = dma.hbm_to_vmem [thread:$0]  %s196_s1, 256, %s24_s20, [#allocation3], %s135_s0, %s135_s0, %s136_s29  }
  0x1a   :  { %127 = dma.done.wait [#allocation5], 16  }
  0x1b   :  { %128 = vsyncadd [#allocation5], 4294967280 }
  0x1c   :  { %129 = dma.done.wait [#allocation3], 256  }
  0x1d   :  { %130 = vsyncadd [#allocation3], 4294967040 }
  0x1e   :  { %36 = sfence }
  0x1f   :  { %s39_s4 = sld [smem:[#allocation2]]  ;;  %s67_s5 = sld [smem:[#allocation2 + $0x1]]  ;;  %v37_v0 = vld [vmem:[#allocation6] sm:$0xff]  ;;  %v38_v1 = vld [vmem:[#allocation6 + $0x8] sm:$0xff] }
  0x20   :  { %s137_s6 = smov [#allocation7]  }
  0x21   :  { %s54_s7 = sshll.u32 %s137_s6, 4  ;;  %s55_s7 = int_to_ptr.vmem [resolvable:$true] %s54_s7 }
  0x22   :  { %s105_s1 = scalar_lea.vmem %s55_s7, 256  ;;  %p110_p12 = scmp.lt.s32.totalorder %s55_s7, %s55_s7 }
  0x23   :  { %p106_p11 = scmp.ne.s32.totalorder %s55_s7, %s105_s1  ;;  %p111_p13 = scmp.lt.s32.totalorder %s105_s1, %s105_s1 }
  0x25   :  { %v40_v2 = vstv %s39_s4  ;;  %v44_v3 = vstv %s67_s5  ;;  %p112_p0 = por %p111_p13, %p110_p12 }
  0x26   :  { %v41_v4 = vmul.f32 %v40_v2, %v37_v0  ;;  %v42_v5 = vmul.f32 %v40_v2, %v38_v1 }
  0x27   :  { %p113_p1 = pnand %p112_p0, %p106_p11 }
  0x28   :  { %v45_v6 = vadd.f32 %v44_v3, %v41_v4  ;;  %v46_v7 = vadd.f32 %v44_v3, %v42_v5 }
  0x2a   :  { %47 = vst [vmem:[#allocation7] sm:$0xff] %v45_v6  ;;  %48 = vst [vmem:[#allocation7 + $0x8] sm:$0xff] %v46_v7 }
  0x2b   :  { %116 = shalt.err (!%p113_p1)
}
  0x2c   :  { %s117_s10 = scalar_lea.hbm %s197_s2, 256 }
  0x2d   :  { %p118_p2 = scmp.ne.s32.totalorder %s197_s2, %s117_s10  ;;  %p121_p3 = scmp.lt.u32.totalorder %s117_s10, %s197_s2 }
  0x2f   :  { %p123_p4 = pnand %p121_p3, %p118_p2 }
  0x31   :  { %126 = shalt.err (!%p123_p4)
}
  0x32   :  { %60 = dma.vmem_to_hbm [thread:$0]  %s55_s7, 256, %s197_s2, [#allocation4], %s135_s0, %s135_s0, %s136_s29  }
  0x33   :  { %131 = dma.done.wait [#allocation4], 256  }
  0x34   :  { %132 = vsyncadd [#allocation4], 4294967040 }
  0x35   :  { %64 = vsyncpa [#allocation3], 1 }
  0x36   :  { %65 = vsyncpa [#allocation4], 1 }
  0x37   :  { %66 = vsyncpa [#allocation5], 1 }

</bundles_post_ra>
